<compile_context>
chip_gen: v7x
topology: tpu7x:2x2x1
jax: 0.10.0
libtpu: 0.0.40
codegen_flags: <defaults>
</compile_context>

<pallas_src>
import functools

import jax
import jax.numpy as jnp
from jax import lax
from jax.experimental import pallas as pl
from jax.experimental.pallas import tpu as pltpu


_LANES = 128
_SUBLANES = 8
_TARGET_BLOCK_BYTES = 2 * 1024 * 1024   # lane-padded bytes per streamed x block
_FUSED_MAX_BYTES = 4 * 1024 * 1024      # lane-padded x bytes allowed for fused kernel
_STREAM_VMEM_LIMIT = 40 * 1024 * 1024
_FUSED_VMEM_LIMIT = 48 * 1024 * 1024


def _use_hw_prng() -> bool:
    # The TPU hardware PRNG primitives only lower on TPU; on CPU (interpret)
    # runs we fall back to host-generated noise inputs.
    return jax.default_backend() == "tpu"


def _padded_cols(c: int) -> int:
    return ((c + _LANES - 1) // _LANES) * _LANES


def _padded_rows(r: int) -> int:
    return ((r + _SUBLANES - 1) // _SUBLANES) * _SUBLANES


def _pick_tile_rows(n_rows: int, n_cols: int) -> int:
    """Rows per streamed block: multiple of 8 (or the full extent), budgeted on
    lane-PADDED f32 bytes so small-F inputs cannot blow the v5e scoped VMEM."""
    if n_rows <= _SUBLANES:
        return n_rows
    row_bytes = _padded_cols(n_cols) * 4
    budget = max(_SUBLANES, _TARGET_BLOCK_BYTES // row_bytes)
    if budget >= n_rows:
        return n_rows
    return max(_SUBLANES, (budget // _SUBLANES) * _SUBLANES)


# ---------------------------------------------------------------------------
# In-kernel standard-normal noise (TPU only; never touches HBM).
# ---------------------------------------------------------------------------
def _std_normal(shape):
    """Standard-normal noise from the TPU hardware PRNG (call prng_seed first)."""
    if hasattr(pltpu, "stateful_normal"):
        return pltpu.stateful_normal(shape, jnp.float32)

    def unit(bits):  # uniform in [0, 1)
        b = pltpu.bitcast(bits, jnp.uint32)
        f = pltpu.bitcast((b >> jnp.uint32(9)) | jnp.uint32(0x3F800000), jnp.float32)
        return f - 1.0

    rows, cols = shape
    if rows % 2 == 0:
        # Box-Muller, using both the cos and sin branch per (u1, u2) draw.
        half = (rows // 2, cols)
        u1 = 1.0 - unit(pltpu.prng_random_bits(half))      # (0, 1]
        u2 = unit(pltpu.prng_random_bits(half))             # [0, 1)
        r = jnp.sqrt(-2.0 * jnp.log(u1))
        t = (2.0 * jnp.pi) * u2
        return jnp.concatenate([r * jnp.cos(t), r * jnp.sin(t)], axis=0)
    u1 = 1.0 - unit(pltpu.prng_random_bits(shape))
    u2 = unit(pltpu.prng_random_bits(shape))
    return jnp.sqrt(-2.0 * jnp.log(u1)) * jnp.cos((2.0 * jnp.pi) * u2)


# ---------------------------------------------------------------------------
# Lane-group helpers for the packed (N*F/128, 128) view.
# Lane l of the packed view holds feature (l % F); the 128/F lane groups are
# folded / broadcast with tiny 0/1 matmuls (no in-kernel lane reshuffles).
# ---------------------------------------------------------------------------
def _row_matmul(row, mat):
    """[1,C] @ [C,C] done as an [8,C] matmul (vanilla MXU shape), exact f32."""
    rows8 = jnp.broadcast_to(row, (_SUBLANES, row.shape[-1]))
    prod = jnp.dot(rows8, mat, precision=lax.Precision.HIGHEST,
                   preferred_element_type=jnp.float32)
    return prod[0:1, :]


def _lane_select_matrix(n_feat, n_cols):
    """S[a, b] = 1 if a == b % n_feat: row0 @ S broadcasts node 0's feature
    (b % n_feat) to every lane b -> common per-feature shift."""
    a = lax.broadcasted_iota(jnp.int32, (n_cols, n_cols), 0)
    b = lax.broadcasted_iota(jnp.int32, (n_cols, n_cols), 1)
    return (a == b % n_feat).astype(jnp.float32)


def _group_fold_matrix(n_feat, n_cols):
    """G[a, b] = 1 if a % n_feat == b % n_feat: s @ G folds the n_cols/n_feat
    lane groups so every lane holds the full per-feature sum."""
    a = lax.broadcasted_iota(jnp.int32, (n_cols, n_cols), 0)
    b = lax.broadcasted_iota(jnp.int32, (n_cols, n_cols), 1)
    return (a % n_feat == b % n_feat).astype(jnp.float32)


def _per_lane_shift(row0, n_feat):
    n_cols = row0.shape[-1]
    if n_feat < n_cols:  # packed view
        return _row_matmul(row0, _lane_select_matrix(n_feat, n_cols))
    return row0


def _scale_from_sums(s, ss, n_nodes, n_feat, p):
    """p * unbiased std(x, dim=0) from (shifted) per-lane sums; folds lane
    groups when packed.  Result is already lane-tiled for the kernel view."""
    n_cols = s.shape[-1]
    if n_feat < n_cols:  # packed view: fold the 128/F lane groups per feature
        g = _group_fold_matrix(n_feat, n_cols)
        s = _row_matmul(s, g)
        ss = _row_matmul(ss, g)
    var = (ss - s * s / n_nodes) / (n_nodes - 1)
    return p * jnp.sqrt(jnp.maximum(var, 0.0))


# ---------------------------------------------------------------------------
# Fused path: x resident in VMEM -> one HBM read + one HBM write.
# ---------------------------------------------------------------------------
def _fused_body(xf, z, o_ref, *, n_nodes, n_feat, p):
    shift = _per_lane_shift(xf[0:1, :], n_feat)     # variance is shift-invariant
    c = xf - shift
    s = jnp.sum(c, axis=0, keepdims=True)
    ss = jnp.sum(c * c, axis=0, keepdims=True)
    scale = _scale_from_sums(s, ss, n_nodes, n_feat, p)
    o_ref[...] = (xf + scale * z).astype(o_ref.dtype)


def _fused_kernel_hw(seed_ref, x_ref, o_ref, *, n_nodes, n_feat, p):
    pltpu.prng_seed(seed_ref[0])
    z = _std_normal(x_ref.shape)
    _fused_body(x_ref[...].astype(jnp.float32), z, o_ref,
                n_nodes=n_nodes, n_feat=n_feat, p=p)


def _fused_kernel_ext(x_ref, z_ref, o_ref, *, n_nodes, n_feat, p):
    _fused_body(x_ref[...].astype(jnp.float32), z_ref[...], o_ref,
                n_nodes=n_nodes, n_feat=n_feat, p=p)


def _fused_noisy(x2d, n_nodes, n_feat, p, seed, out_dtype):
    rows, cols = x2d.shape
    out_shape = jax.ShapeDtypeStruct((rows, cols), out_dtype)
    params = pltpu.CompilerParams(vmem_limit_bytes=_FUSED_VMEM_LIMIT)
    if _use_hw_prng():
        kern = functools.partial(_fused_kernel_hw, n_nodes=n_nodes, n_feat=n_feat, p=p)
        return pl.pallas_call(
            kern, out_shape=out_shape,
            grid_spec=pltpu.PrefetchScalarGridSpec(
                num_scalar_prefetch=1, grid=(1,),
                in_specs=[pl.BlockSpec((rows, cols), lambda i, _s: (0, 0))],
                out_specs=pl.BlockSpec((rows, cols), lambda i, _s: (0, 0))),
            compiler_params=params,
        )(jnp.asarray([seed], dtype=jnp.int32), x2d)
    # Non-TPU fallback: feed host-generated noise as a regular input.
    z = jax.random.normal(jax.random.PRNGKey(seed), (rows, cols), jnp.float32)
    kern = functools.partial(_fused_kernel_ext, n_nodes=n_nodes, n_feat=n_feat, p=p)
    spec = pl.BlockSpec((rows, cols), lambda i: (0, 0))
    return pl.pallas_call(
        kern, out_shape=out_shape,
        grid_spec=pltpu.PrefetchScalarGridSpec(
            num_scalar_prefetch=0, grid=(1,),
            in_specs=[spec, spec], out_specs=spec),
        compiler_params=params,
    )(x2d, z)


# ---------------------------------------------------------------------------
# Streaming fallback (x too large to keep resident): stats pass + apply pass.
# ---------------------------------------------------------------------------
def _stats_kernel(x_ref, scale_ref, sum_ref, sumsq_ref, shift_ref, *,
                  n_view_rows, n_nodes, tile_rows, n_feat, p, needs_mask):
    i = pl.program_id(0)
    last = pl.num_programs(0) - 1
    x = x_ref[...].astype(jnp.float32)

    @pl.when(i == 0)
    def _init():
        shift_ref[...] = _per_lane_shift(x[0:1, :], n_feat)
        sum_ref[...] = jnp.zeros_like(sum_ref)
        sumsq_ref[...] = jnp.zeros_like(sumsq_ref)

    def _accumulate(c):
        sum_ref[...] += jnp.sum(c, axis=0, keepdims=True)
        sumsq_ref[...] += jnp.sum(c * c, axis=0, keepdims=True)

    c = x - shift_ref[...]
    if needs_mask:
        # Only the final block carries padded rows; keep the mask off the hot path.
        @pl.when(i != last)
        def _body():
            _accumulate(c)

        @pl.when(i == last)
        def _tail():
            row = i * tile_rows + lax.broadcasted_iota(jnp.int32, c.shape, 0)
            _accumulate(jnp.where(row < n_view_rows, c, 0.0))
    else:
        _accumulate(c)

    @pl.when(i == last)
    def _finalize():
        scale_ref[...] = _scale_from_sums(sum_ref[...], sumsq_ref[...],
                                          n_nodes, n_feat, p)


def _noise_scale_streaming(x2d, n_nodes, n_feat, p):
    rows, cols = x2d.shape
    tile = _pick_tile_rows(rows, cols)
    kern = functools.partial(
        _stats_kernel, n_view_rows=rows, n_nodes=n_nodes, tile_rows=tile,
        n_feat=n_feat, p=float(p), needs_mask=(rows % tile != 0))
    # TODO(synk): v7x-only dual-TensorCore split of this reduction (per-core
    # partials + Chan combine) is not implemented; single core streams x here.
    return pl.pallas_call(
        kern,
        out_shape=jax.ShapeDtypeStruct((1, cols), jnp.float32),
        grid_spec=pltpu.PrefetchScalarGridSpec(
            num_scalar_prefetch=0,
            grid=(pl.cdiv(rows, tile),),
            in_specs=[pl.BlockSpec((tile, cols), lambda i: (i, 0))],
            out_specs=pl.BlockSpec((1, cols), lambda i: (0, 0)),
            scratch_shapes=[pltpu.VMEM((1, cols), jnp.float32)] * 3),
        compiler_params=pltpu.CompilerParams(
            dimension_semantics=("arbitrary",),
            vmem_limit_bytes=_STREAM_VMEM_LIMIT),
    )(x2d)


def _apply_kernel_hw(seed_ref, x_ref, scale_ref, o_ref):
    # Reseed per grid step -> deterministic regardless of megacore sharding.
    pltpu.prng_seed(seed_ref[0], pl.program_id(0))
    z = _std_normal(x_ref.shape)
    o_ref[...] = (x_ref[...].astype(jnp.float32) + scale_ref[...] * z).astype(o_ref.dtype)


def _apply_kernel_ext(x_ref, scale_ref, z_ref, o_ref):
    o_ref[...] = (x_ref[...].astype(jnp.float32)
                  + scale_ref[...] * z_ref[...]).astype(o_ref.dtype)


def _apply_noise_streaming(x2d, scale2d, seed, out_dtype):
    rows, cols = x2d.shape
    tile = _pick_tile_rows(rows, cols)
    grid = (pl.cdiv(rows, tile),)
    out_shape = jax.ShapeDtypeStruct((rows, cols), out_dtype)
    params = pltpu.CompilerParams(dimension_semantics=("parallel",),
                                  vmem_limit_bytes=_STREAM_VMEM_LIMIT)
    if _use_hw_prng():
        return pl.pallas_call(
            _apply_kernel_hw, out_shape=out_shape,
            grid_spec=pltpu.PrefetchScalarGridSpec(
                num_scalar_prefetch=1, grid=grid,
                in_specs=[pl.BlockSpec((tile, cols), lambda i, _s: (i, 0)),
                          pl.BlockSpec((1, cols), lambda i, _s: (0, 0))],
                out_specs=pl.BlockSpec((tile, cols), lambda i, _s: (i, 0))),
            compiler_params=params,
        )(jnp.asarray([seed], dtype=jnp.int32), x2d, scale2d)
    z = jax.random.normal(jax.random.PRNGKey(seed), (rows, cols), jnp.float32)
    return pl.pallas_call(
        _apply_kernel_ext, out_shape=out_shape,
        grid_spec=pltpu.PrefetchScalarGridSpec(
            num_scalar_prefetch=0, grid=grid,
            in_specs=[pl.BlockSpec((tile, cols), lambda i: (i, 0)),
                      pl.BlockSpec((1, cols), lambda i: (0, 0)),
                      pl.BlockSpec((tile, cols), lambda i: (i, 0))],
            out_specs=pl.BlockSpec((tile, cols), lambda i: (i, 0))),
        compiler_params=params,
    )(x2d, scale2d, z)


# ---------------------------------------------------------------------------
# Public wrapper: NoisyNodeFeat.forward
# ---------------------------------------------------------------------------
def noisy_node_feat(x, edge_index, edge_attr=None, batch=None, *, p=0.05, seed=0):
    n, f = x.shape
    # torch: x + (f32 std) * (f32 randn) promotes to f32 -> keep the promotion.
    out_dtype = jnp.result_type(x.dtype, jnp.float32)

    # Lane-dense packed view (N, F<128) -> (N*F/128, 128): full-width vld/vst,
    # no lane padding in VMEM; used for BOTH the stats and the apply math.
    packable = (f < _LANES) and (_LANES % f == 0) and ((n * f) % _LANES == 0)
    view = x.reshape((n * f) // _LANES, _LANES) if packable else x
    rows, cols = view.shape
    padded_bytes = _padded_rows(rows) * _padded_cols(cols) * 4

    if n > 1:  # static shape -> resolved at trace time (mirrors the torch `if`)
        if padded_bytes <= _FUSED_MAX_BYTES:
            # Fused single kernel: 1 HBM read + 1 HBM write of x.
            out_view = _fused_noisy(view, n, f, float(p), seed, out_dtype)
        else:
            # Streaming fallback: stats pass, then apply pass.
            scale = _noise_scale_streaming(view, n, f, float(p))
            out_view = _apply_noise_streaming(view, scale, seed, out_dtype)
    else:
        # torch falls back to std = ones(F) -> noise scale is just p.
        scale = jnp.full((1, cols), float(p), dtype=jnp.float32)
        out_view = _apply_noise_streaming(view, scale, seed, out_dtype)

    x_out = out_view.reshape(n, f) if packable else out_view
    return (x_out, edge_index, edge_attr, batch, None)


if __name__ == "__main__":
    key = jax.random.PRNGKey(0)
    k_x, k_e, k_big = jax.random.split(key, 3)

    # --- small graph: exercises the fused single-kernel path ------------------
    num_nodes, feat_dim, num_edges = 128, 32, 256
    p = 0.05
    x = 3.0 + 2.0 * jax.random.normal(k_x, (num_nodes, feat_dim), dtype=jnp.float32)
    edge_index = jax.random.randint(k_e, (2, num_edges), 0, num_nodes, dtype=jnp.int32)
    batch = jnp.zeros((num_nodes,), dtype=jnp.int32)

    x_out, ei_out, ea_out, b_out, none_out = noisy_node_feat(
        x, edge_index, edge_attr=None, batch=batch, p=p, seed=1234)
    jax.block_until_ready(x_out)

    assert x_out.shape == x.shape and x_out.dtype == jnp.float32
    assert none_out is None and ea_out is None
    assert ei_out is edge_index and b_out is batch

    # Noise stream differs from torch.randn (statistically equivalent); validate
    # against the spec x_out = x + p * std(x, 0) * N(0, 1).
    std_ref = jnp.std(x, axis=0, ddof=1)
    z = (x_out - x) / (p * std_ref)
    assert jnp.all(jnp.isfinite(z))
    assert abs(float(jnp.mean(z))) < 0.1, float(jnp.mean(z))
    assert abs(float(jnp.std(z)) - 1.0) < 0.1, float(jnp.std(z))
    col_std = jnp.std(z, axis=0)
    assert float(jnp.max(jnp.abs(col_std - 1.0))) < 0.35, col_std

    # Determinism: same seed -> bit-identical output.
    x_out2 = noisy_node_feat(x, edge_index, batch=batch, p=p, seed=1234)[0]
    assert jnp.array_equal(x_out, x_out2)

    # --- single node: std falls back to ones -> noise scale == p --------------
    x1 = jax.random.normal(k_x, (1, 128), dtype=jnp.float32)
    y1 = noisy_node_feat(x1, edge_index, p=p, seed=7)[0]
    jax.block_until_ready(y1)
    z1 = (y1 - x1) / p
    assert y1.shape == x1.shape and jnp.all(jnp.isfinite(z1))
    assert 0.5 < float(jnp.std(z1)) < 1.5

    # --- larger graph: exercises the two-pass streaming fallback --------------
    n_big, f_big = 40960, 32          # packed view (10240, 128) > fused VMEM gate
    x_big = -1.5 + 0.5 * jax.random.normal(k_big, (n_big, f_big), dtype=jnp.float32)
    y_big = noisy_node_feat(x_big, edge_index, p=p, seed=99)[0]
    jax.block_until_ready(y_big)
    std_big = jnp.std(x_big, axis=0, ddof=1)
    z_big = (y_big - x_big) / (p * std_big)
    assert jnp.all(jnp.isfinite(z_big))
    assert abs(float(jnp.mean(z_big))) < 0.05, float(jnp.mean(z_big))
    assert abs(float(jnp.std(z_big)) - 1.0) < 0.05, float(jnp.std(z_big))

    print("KERNEL_OK")
</pallas_src>

<mosaic_0001>
module attributes {stable_mosaic.version = 11 : i64} {
  func.func @_fused_kernel_ext(%arg0: i32, %arg1: memref<32x128xf32, #tpu.memory_space<vmem>>, %arg2: memref<32x128xf32, #tpu.memory_space<vmem>>, %arg3: memref<32x128xf32, #tpu.memory_space<vmem>>) attributes {dimension_semantics = [#tpu.dimension_semantics<arbitrary>], iteration_bounds = array<i64: 1>, scalar_prefetch = 0 : i64, scratch_operands = 0 : i64, tpu.core_type = #tpu.core_type<tc>, window_params = [{pipeline_mode = #tpu.pipeline_mode<synchronous>, transform_indices = @transform_0, window_bounds = array<i64: 32, 128>}, {pipeline_mode = #tpu.pipeline_mode<synchronous>, transform_indices = @transform_1, window_bounds = array<i64: 32, 128>}, {pipeline_mode = #tpu.pipeline_mode<synchronous>, transform_indices = @transform_2, window_bounds = array<i64: 32, 128>}]} {
    %c0 = arith.constant 0 : index
    %c0_0 = arith.constant 0 : index
    %0 = vector.load %arg1[%c0, %c0_0] : memref<32x128xf32, #tpu.memory_space<vmem>>, vector<32x128xf32>
    %c0_1 = arith.constant 0 : index
    %c0_2 = arith.constant 0 : index
    %1 = vector.load %arg2[%c0_1, %c0_2] : memref<32x128xf32, #tpu.memory_space<vmem>>, vector<32x128xf32>
    %2 = vector.extract_strided_slice %0 {offsets = [0, 0], sizes = [1, 128], strides = [1, 1]} : vector<32x128xf32> to vector<1x128xf32>
    %3 = tpu.iota {dimensions = array<i32: 0>} : vector<128x128xi32>
    %4 = tpu.iota {dimensions = array<i32: 1>} : vector<128x128xi32>
    %c32_i32 = arith.constant 32 : i32
    %c0_i32 = arith.constant 0 : i32
    %5 = arith.cmpi eq, %c32_i32, %c0_i32 : i32
    %c1_i32 = arith.constant 1 : i32
    %6 = arith.select %5, %c1_i32, %c32_i32 : i32
    %7 = vector.broadcast %6 : i32 to vector<128x128xi32>
    %8 = arith.remsi %4, %7 : vector<128x128xi32>
    %c0_i32_3 = arith.constant 0 : i32
    %9 = vector.broadcast %c0_i32_3 : i32 to vector<128x128xi32>
    %10 = arith.cmpi ne, %8, %9 : vector<128x128xi32>
    %c0_i32_4 = arith.constant 0 : i32
    %11 = vector.broadcast %c0_i32_4 : i32 to vector<128x128xi32>
    %12 = arith.cmpi slt, %8, %11 : vector<128x128xi32>
    %c0_i32_5 = arith.constant 0 : i32
    %13 = arith.cmpi slt, %6, %c0_i32_5 : i32
    %14 = vector.broadcast %13 : i1 to vector<128x128xi1>
    %15 = vector.broadcast %14 : vector<128x128xi1> to vector<128x128xi1>
    %16 = arith.xori %12, %15 : vector<128x128xi1>
    %17 = arith.andi %16, %10 : vector<128x128xi1>
    %18 = vector.broadcast %6 : i32 to vector<128x128xi32>
    %19 = arith.addi %8, %18 : vector<128x128xi32>
    %20 = arith.select %17, %19, %8 : vector<128x128xi1>, vector<128x128xi32>
    %21 = arith.cmpi eq, %3, %20 : vector<128x128xi32>
    %22 = arith.extui %21 : vector<128x128xi1> to vector<128x128xi32>
    %23 = arith.sitofp %22 : vector<128x128xi32> to vector<128x128xf32>
    %24 = vector.shape_cast %2 : vector<1x128xf32> to vector<1x128xf32>
    %25 = vector.broadcast %24 : vector<1x128xf32> to vector<8x128xf32>
    %cst = arith.constant dense<0.000000e+00> : vector<8x128xf32>
    %26 = tpu.matmul %25, %23, %cst {dimension_numbers = #tpu.dot_dimension_numbers<[1], [0], [0], [1], [0, 0, 1, 1], [], []>, precision = #tpu.contract_precision<fp32>} : vector<8x128xf32>, vector<128x128xf32>, vector<8x128xf32> -> vector<8x128xf32>
    %27 = vector.extract_strided_slice %26 {offsets = [0, 0], sizes = [1, 128], strides = [1, 1]} : vector<8x128xf32> to vector<1x128xf32>
    %28 = vector.broadcast %27 : vector<1x128xf32> to vector<32x128xf32>
    %29 = arith.subf %0, %28 : vector<32x128xf32>
    %cst_6 = arith.constant dense<0.000000e+00> : vector<128xf32>
    %30 = vector.multi_reduction <add>, %29, %cst_6 [0] : vector<32x128xf32> to vector<128xf32>
    %31 = vector.shape_cast %30 : vector<128xf32> to vector<1x128xf32>
    %32 = arith.mulf %29, %29 : vector<32x128xf32>
    %cst_7 = arith.constant dense<0.000000e+00> : vector<128xf32>
    %33 = vector.multi_reduction <add>, %32, %cst_7 [0] : vector<32x128xf32> to vector<128xf32>
    %34 = vector.shape_cast %33 : vector<128xf32> to vector<1x128xf32>
    %35 = tpu.iota {dimensions = array<i32: 0>} : vector<128x128xi32>
    %36 = tpu.iota {dimensions = array<i32: 1>} : vector<128x128xi32>
    %c32_i32_8 = arith.constant 32 : i32
    %c0_i32_9 = arith.constant 0 : i32
    %37 = arith.cmpi eq, %c32_i32_8, %c0_i32_9 : i32
    %c1_i32_10 = arith.constant 1 : i32
    %38 = arith.select %37, %c1_i32_10, %c32_i32_8 : i32
    %39 = vector.broadcast %38 : i32 to vector<128x128xi32>
    %40 = arith.remsi %35, %39 : vector<128x128xi32>
    %c0_i32_11 = arith.constant 0 : i32
    %41 = vector.broadcast %c0_i32_11 : i32 to vector<128x128xi32>
    %42 = arith.cmpi ne, %40, %41 : vector<128x128xi32>
    %c0_i32_12 = arith.constant 0 : i32
    %43 = vector.broadcast %c0_i32_12 : i32 to vector<128x128xi32>
    %44 = arith.cmpi slt, %40, %43 : vector<128x128xi32>
    %c0_i32_13 = arith.constant 0 : i32
    %45 = arith.cmpi slt, %38, %c0_i32_13 : i32
    %46 = vector.broadcast %45 : i1 to vector<128x128xi1>
    %47 = vector.broadcast %46 : vector<128x128xi1> to vector<128x128xi1>
    %48 = arith.xori %44, %47 : vector<128x128xi1>
    %49 = arith.andi %48, %42 : vector<128x128xi1>
    %50 = vector.broadcast %38 : i32 to vector<128x128xi32>
    %51 = arith.addi %40, %50 : vector<128x128xi32>
    %52 = arith.select %49, %51, %40 : vector<128x128xi1>, vector<128x128xi32>
    %c32_i32_14 = arith.constant 32 : i32
    %c0_i32_15 = arith.constant 0 : i32
    %53 = arith.cmpi eq, %c32_i32_14, %c0_i32_15 : i32
    %c1_i32_16 = arith.constant 1 : i32
    %54 = arith.select %53, %c1_i32_16, %c32_i32_14 : i32
    %55 = vector.broadcast %54 : i32 to vector<128x128xi32>
    %56 = arith.remsi %36, %55 : vector<128x128xi32>
    %c0_i32_17 = arith.constant 0 : i32
    %57 = vector.broadcast %c0_i32_17 : i32 to vector<128x128xi32>
    %58 = arith.cmpi ne, %56, %57 : vector<128x128xi32>
    %c0_i32_18 = arith.constant 0 : i32
    %59 = vector.broadcast %c0_i32_18 : i32 to vector<128x128xi32>
    %60 = arith.cmpi slt, %56, %59 : vector<128x128xi32>
    %c0_i32_19 = arith.constant 0 : i32
    %61 = arith.cmpi slt, %54, %c0_i32_19 : i32
    %62 = vector.broadcast %61 : i1 to vector<128x128xi1>
    %63 = vector.broadcast %62 : vector<128x128xi1> to vector<128x128xi1>
    %64 = arith.xori %60, %63 : vector<128x128xi1>
    %65 = arith.andi %64, %58 : vector<128x128xi1>
    %66 = vector.broadcast %54 : i32 to vector<128x128xi32>
    %67 = arith.addi %56, %66 : vector<128x128xi32>
    %68 = arith.select %65, %67, %56 : vector<128x128xi1>, vector<128x128xi32>
    %69 = arith.cmpi eq, %52, %68 : vector<128x128xi32>
    %70 = arith.extui %69 : vector<128x128xi1> to vector<128x128xi32>
    %71 = arith.sitofp %70 : vector<128x128xi32> to vector<128x128xf32>
    %72 = vector.shape_cast %31 : vector<1x128xf32> to vector<1x128xf32>
    %73 = vector.broadcast %72 : vector<1x128xf32> to vector<8x128xf32>
    %cst_20 = arith.constant dense<0.000000e+00> : vector<8x128xf32>
    %74 = tpu.matmul %73, %71, %cst_20 {dimension_numbers = #tpu.dot_dimension_numbers<[1], [0], [0], [1], [0, 0, 1, 1], [], []>, precision = #tpu.contract_precision<fp32>} : vector<8x128xf32>, vector<128x128xf32>, vector<8x128xf32> -> vector<8x128xf32>
    %75 = vector.extract_strided_slice %74 {offsets = [0, 0], sizes = [1, 128], strides = [1, 1]} : vector<8x128xf32> to vector<1x128xf32>
    %76 = vector.shape_cast %34 : vector<1x128xf32> to vector<1x128xf32>
    %77 = vector.broadcast %76 : vector<1x128xf32> to vector<8x128xf32>
    %cst_21 = arith.constant dense<0.000000e+00> : vector<8x128xf32>
    %78 = tpu.matmul %77, %71, %cst_21 {dimension_numbers = #tpu.dot_dimension_numbers<[1], [0], [0], [1], [0, 0, 1, 1], [], []>, precision = #tpu.contract_precision<fp32>} : vector<8x128xf32>, vector<128x128xf32>, vector<8x128xf32> -> vector<8x128xf32>
    %79 = vector.extract_strided_slice %78 {offsets = [0, 0], sizes = [1, 128], strides = [1, 1]} : vector<8x128xf32> to vector<1x128xf32>
    %80 = arith.mulf %75, %75 : vector<1x128xf32>
    %cst_22 = arith.constant 1.280000e+02 : f32
    %81 = vector.broadcast %cst_22 : f32 to vector<1x128xf32>
    %82 = arith.divf %80, %81 : vector<1x128xf32>
    %83 = arith.subf %79, %82 : vector<1x128xf32>
    %cst_23 = arith.constant 1.270000e+02 : f32
    %84 = vector.broadcast %cst_23 : f32 to vector<1x128xf32>
    %85 = arith.divf %83, %84 : vector<1x128xf32>
    %cst_24 = arith.constant 0.000000e+00 : f32
    %86 = vector.broadcast %cst_24 : f32 to vector<1x128xf32>
    %87 = arith.maximumf %85, %86 : vector<1x128xf32>
    %88 = math.sqrt %87 : vector<1x128xf32>
    %cst_25 = arith.constant 5.000000e-02 : f32
    %89 = vector.broadcast %cst_25 : f32 to vector<1x128xf32>
    %90 = arith.mulf %89, %88 : vector<1x128xf32>
    %91 = vector.broadcast %90 : vector<1x128xf32> to vector<32x128xf32>
    %92 = arith.mulf %91, %1 : vector<32x128xf32>
    %93 = arith.addf %0, %92 : vector<32x128xf32>
    %c0_26 = arith.constant 0 : index
    %c0_27 = arith.constant 0 : index
    %94 = vector.load %arg3[%c0_26, %c0_27] : memref<32x128xf32, #tpu.memory_space<vmem>>, vector<32x128xf32>
    tpu.vector_store %arg3[%c0_26, %c0_27], %93 {strides = array<i32>} : memref<32x128xf32, #tpu.memory_space<vmem>>, vector<32x128xf32>,
    return
  }
  func.func @transform_0(%arg0: i32) -> (i32, i32) {
    %c0_i32 = arith.constant 0 : i32
    %c0_i32_0 = arith.constant 0 : i32
    %c0_i32_1 = arith.constant 0 : i32
    return %c0_i32, %c0_i32_0 : i32, i32
  }
  func.func @transform_1(%arg0: i32) -> (i32, i32) {
    %c0_i32 = arith.constant 0 : i32
    %c0_i32_0 = arith.constant 0 : i32
    %c0_i32_1 = arith.constant 0 : i32
    return %c0_i32, %c0_i32_0 : i32, i32
  }
  func.func @transform_2(%arg0: i32) -> (i32, i32) {
    %c0_i32 = arith.constant 0 : i32
    %c0_i32_0 = arith.constant 0 : i32
    %c0_i32_1 = arith.constant 0 : i32
    return %c0_i32, %c0_i32_0 : i32, i32
  }
}

</mosaic_0001>

<bundles_post_ra>
// kernel: tpu_custom_call.1
= control target key start
LH: loop header
LB: loop body
LE: loop exit
PB: predicated region body
PF: predicated region fallthrough
CT: control target
= control target key end

     0   :  { %7 = vsyncpa [#allocation3], 0  ;;  %s4545_s0 = inlined_call_operand.hbm [shape: f32[32,128], index: 0, kind: input, shape index: {}]   ;;  %s4546_s1 = inlined_call_operand.hbm [shape: f32[32,128], index: 1, kind: input, shape index: {}]   ;;  %s4547_s2 = inlined_call_operand.hbm [shape: f32[32,128], index: 2, kind: output, shape index: {}]  }
   0x1   :  { %8 = vsyncpa [#allocation6], 0 }
   0x2   :  { %9 = vsyncpa [#allocation4], 0  ;;  %s3657_s9 = smov [#allocation2]   ;;  %s3585_s13 = scalar_lea.hbm %s4545_s0, 512 }
   0x3   :  { %s15_s10 = sshll.u32 %s3657_s9, 4  ;;  %p3586_p0 = scmp.ne.s32.totalorder %s4545_s0, %s3585_s13  ;;  %s16_s10 = int_to_ptr.vmem [resolvable:$true] %s15_s10 }
   0x4   :  { %p3589_p1 = scmp.lt.u32.totalorder %s3585_s13, %s4545_s0 }
   0x6   :  { %p3591_p2 = pnand %p3589_p1, %p3586_p0 }
   0x8   :  { %3594 = shalt.err (!%p3591_p2)
}
   0x9   :  { %s3595_s18 = scalar_lea.vmem %s16_s10, 512  ;;  %p3600_p4 = scmp.lt.s32.totalorder %s16_s10, %s16_s10 }
   0xa   :  { %p3596_p3 = scmp.ne.s32.totalorder %s16_s10, %s3595_s18  ;;  %p3601_p5 = scmp.lt.s32.totalorder %s3595_s18, %s3595_s18 }
   0xc   :  { %p3602_p6 = por %p3601_p5, %p3600_p4 }
   0xe   :  { %p3603_p7 = pnand %p3602_p6, %p3596_p3 }
  0x10   :  { %3606 = shalt.err (!%p3603_p7)
}
  0x11   :  { %s3658_s19 = smov 128   ;;  %s3659_s20 = smov 8  }
  0x12   :  { %21 = dma.hbm_to_vmem [thread:$0]  %s4545_s0, 512, %s16_s10, [#allocation3], %s3658_s19, %s3658_s19, %s3659_s20  }
  0x13   :  { %s3660_s23 = smov [#allocation5]   ;;  %s3607_s27 = scalar_lea.hbm %s4546_s1, 512 }
  0x14   :  { %s27_s24 = sshll.u32 %s3660_s23, 4  ;;  %p3608_p8 = scmp.ne.s32.totalorder %s4546_s1, %s3607_s27  ;;  %s28_s24 = int_to_ptr.vmem [resolvable:$true] %s27_s24 }
  0x15   :  { %p3611_p9 = scmp.lt.u32.totalorder %s3607_s27, %s4546_s1 }
  0x17   :  { %p3613_p10 = pnand %p3611_p9, %p3608_p8 }
  0x19   :  { %3616 = shalt.err (!%p3613_p10)
}
  0x1a   :  { %s3617_s4 = scalar_lea.vmem %s28_s24, 512  ;;  %p3622_p12 = scmp.lt.s32.totalorder %s28_s24, %s28_s24 }
  0x1b   :  { %p3618_p11 = scmp.ne.s32.totalorder %s28_s24, %s3617_s4  ;;  %p3623_p13 = scmp.lt.s32.totalorder %s3617_s4, %s3617_s4 }
  0x1d   :  { %p3624_p0 = por %p3623_p13, %p3622_p12 }
  0x1f   :  { %p3625_p1 = pnand %p3624_p0, %p3618_p11 }
  0x21   :  { %3628 = shalt.err (!%p3625_p1)
}
  0x22   :  { %33 = dma.hbm_to_vmem [thread:$0]  %s4546_s1, 512, %s28_s24, [#allocation6], %s3658_s19, %s3658_s19, %s3659_s20  }
  0x23   :  { %3651 = dma.done.wait [#allocation3], 512  }
  0x24   :  { %3652 = vsyncadd [#allocation3], 4294966784 }
  0x25   :  { %3653 = dma.done.wait [#allocation6], 512  }
  0x26   :  { %3654 = vsyncadd [#allocation6], 4294966784  ;;  %v48_v0 = vlaneseq  ;;  %v4566_v1 = vmov 0.0|0.0   ;;  %vm3662_vm0 = vmmov 0   ;;  %v4568_v4 = vmov 0.0   ;;  %v3752_v18 = vld [vmem:[#allocation2] sm:$0xff] }
  0x27   :  { %3221 = vmatprep.subr.bf16.mxu0 %v4566_v1  ;;  %3257 = vmatprep.subr.bf16.mxu1 %v4566_v1  ;;  %v4564_v14 = vmov 1.0|1.0   ;;  %4576 = vst [vmem:[#allocation11_spill] sm:$0xff] %v3752_v18  ;;  %s3665_s1 = smov [#allocation7]  }
  0x28   :  { %v3713_v2 = vshrl.u32 %v48_v0, 7  ;;  %v66_v3 = vand.u32 127, %v48_v0  ;;  %2743 = vmatprep.mubr.msk.f32.mxu0 %vm3662_vm0, %v4568_v4  ;;  %2833 = vmatprep.mubr.msk.f32.mxu1 %vm3662_vm0, %v4568_v4  ;;  %s2360_s6 = sshll.u32 %s3665_s1, 4  ;;  %s2361_s6 = int_to_ptr.vmem [resolvable:$true] %s2360_s6 }
  0x29   :  { %s3629_s7 = scalar_lea.vmem %s2361_s6, 512  ;;  %p3634_p3 = scmp.lt.s32.totalorder %s2361_s6, %s2361_s6 }
  0x2a   :  { %v3720_v5 = vadd.s32 8, %v3713_v2  ;;  %v3722_v6 = vand.u32 31, %v66_v3  ;;  %v3725_v7 = vadd.s32 16, %v3713_v2  ;;  %v3728_v8 = vadd.s32 24, %v3713_v2  ;;  %p3630_p2 = scmp.ne.s32.totalorder %s2361_s6, %s3629_s7  ;;  %p3635_p4 = scmp.lt.s32.totalorder %s3629_s7, %s3629_s7 }
  0x2b   :  { %v3737_v9 = vsub.s32 0, %v3713_v2  ;;  %v806_v45 = vand.u32 31, %v3713_v2  ;;  %v53_v19 = vadd.s32 32, %v3713_v2  ;;  %v60_v49 = vadd.s32 88, %v3713_v2 }
  0x2c   :  { %vm79_vm1 = vcmp.eq.s32.totalorder %v3713_v2, %v3722_v6  ;;  %vm80_vm2 = vcmp.eq.s32.totalorder %v3720_v5, %v3722_v6  ;;  %vm81_vm3 = vcmp.eq.s32.totalorder %v3725_v7, %v3722_v6  ;;  %vm82_vm5 = vcmp.eq.s32.totalorder %v3728_v8, %v3722_v6  ;;  %p3636_p5 = por %p3635_p4, %p3634_p3 }
  0x2d   :  { %v2373_v10 = vsel %vm79_vm1, 1.0, %v4568_v4  ;;  %v2374_v11 = vsel %vm80_vm2, 1.0, %v4568_v4  ;;  %vm3741_vm4 = vmpackc.low %vm80_vm2, %vm79_vm1  ;;  %v2375_v13 = vsel %vm81_vm3, 1.0, %v4568_v4  ;;  %v2376_v17 = vsel %vm82_vm5, 1.0, %v4568_v4 }
  0x2e   :  { %3223 = vmatpush3.bf16.msk.msra.mxu0 %vm3741_vm4, %v4564_v14  ;;  %v224_v15 = vsub.f32 %v2373_v10, %v2373_v10  ;;  %v231_v16 = vsub.f32 %v2374_v11, %v2374_v11  ;;  %vm3755_vm6 = vmpackc.low %vm82_vm5, %vm81_vm3  ;;  %v3759_v20 = vsub.f32 %v2375_v13, %v2375_v13  ;;  %v3761_v21 = vsub.f32 %v2376_v17, %v2376_v17  ;;  %p3637_p6 = pnand %p3636_p5, %p3630_p2 }
  0x2f   :  { %3224 = vmatprep.subr.bf16.mxu0 %v4566_v1  ;;  %v130_v24 = vrot.slane %v3752_v18, %v3737_v9  ;;  %v813_v44 = vand.u32 31, %v3720_v5  ;;  %v820_v46 = vand.u32 31, %v3725_v7  ;;  %v827_v48 = vand.u32 31, %v3728_v8 }
  0x30   :  { %v225_v22 = vand.u32 4294901760, %v224_v15  ;;  %v232_v23 = vand.u32 4294901760, %v231_v16  ;;  %v239_v27 = vand.u32 4294901760, %v3759_v20  ;;  %v246_v28 = vand.u32 4294901760, %v3761_v21 }
  0x31   :  { %v3771_v29 = vand.u32 4294901760, %v130_v24  ;;  %v3234_v42 = vpack.c.bf16 %v231_v16, %v224_v15  ;;  %v3237_v43 = vpack.c.bf16 %v3761_v21, %v3759_v20  ;;  %vm3791_vm7 = vcmp.eq.s32.totalorder %v813_v44, %v3722_v6 }
  0x32   :  { %v226_v25 = vsub.f32 %v224_v15, %v225_v22  ;;  %v233_v26 = vsub.f32 %v231_v16, %v232_v23  ;;  %3226 = vmatpush3.bf16.msk.msra.mxu0 %vm3755_vm6, %v4564_v14  ;;  %v240_v33 = vsub.f32 %v3759_v20, %v239_v27  ;;  %v247_v34 = vsub.f32 %v3761_v21, %v246_v28 }
  0x33   :  { %3227 = vmatprep.subr.bf16.mxu0 %v4566_v1  ;;  %v213_v30 = vsub.f32 %v130_v24, %v3771_v29  ;;  %vm3797_vm8 = vcmp.eq.s32.totalorder %v806_v45, %v3722_v6  ;;  %v2390_v50 = vsel %vm3791_vm7, 1.0, %v4568_v4  ;;  %vm3810_vm9 = vcmp.eq.s32.totalorder %v820_v46, %v3722_v6 }
  0x34   :  { %v227_v31 = vand.u32 4294901760, %v226_v25  ;;  %v234_v32 = vand.u32 4294901760, %v233_v26  ;;  %v241_v38 = vand.u32 4294901760, %v240_v33  ;;  %v248_v39 = vand.u32 4294901760, %v247_v34  ;;  %vm3943_vm15 = vmpackc.low %vm3791_vm7, %vm3797_vm8 }
  0x35   :  { %v214_v35 = vand.u32 4294901760, %v213_v30  ;;  %v2389_v52 = vsel %vm3797_vm8, 1.0, %v4568_v4  ;;  %vm3819_vm10 = vcmp.eq.s32.totalorder %v827_v48, %v3722_v6  ;;  %v3823_v54 = vsub.f32 %v2390_v50, %v2390_v50  ;;  %3259 = vmatpush3.bf16.msk.msra.mxu1 %vm3943_vm15, %v4564_v14 }
  0x36   :  { %v3228_v37 = vpack.c.bf16 %v234_v32, %v227_v31  ;;  %v3231_v41 = vpack.c.bf16 %v248_v39, %v241_v38  ;;  %v2391_v55 = vsel %vm3810_vm9, 1.0, %v4568_v4  ;;  %v3246_v56 = vpack.c.bf16 %v232_v23, %v225_v22  ;;  %3260 = vmatprep.subr.bf16.mxu1 %v4566_v1  ;;  %vm3987_vm3 = vmpackc.low %vm3819_vm10, %vm3810_vm9 }
  0x37   :  { %v215_v36 = vsub.f32 %v213_v30, %v214_v35  ;;  %v3831_v57 = vsub.f32 %v2389_v52, %v2389_v52  ;;  %v2392_v58 = vsel %vm3819_vm10, 1.0, %v4568_v4  ;;  %v3837_v59 = vsub.f32 %v2391_v55, %v2391_v55 }
  0x38   :  { %v3839_v60 = vsub.f32 %v2392_v58, %v2392_v58  ;;  %v3249_v61 = vpack.c.bf16 %v246_v28, %v239_v27  ;;  %v4562_v63 = vand.u32 4294901760, %v3823_v54  ;;  %v54_v20 = vadd.s32 40, %v3713_v2 }
  0x39   :  { %v216_v40 = vand.u32 4294901760, %v215_v36  ;;  %v4563_v62 = vand.u32 4294901760, %v3831_v57  ;;  %v4561_v5 = vand.u32 4294901760, %v3837_v59  ;;  %v834_v21 = vand.u32 31, %v53_v19  ;;  %3262 = vmatpush3.bf16.msk.msra.mxu1 %vm3987_vm3, %v4564_v14 }
  0x3a   :  { %v1144_v3 = vsub.f32 %v3823_v54, %v4562_v63  ;;  %v4560_v7 = vand.u32 4294901760, %v3839_v60  ;;  %v841_v22 = vand.u32 31, %v54_v20  ;;  %v55_v25 = vadd.s32 48, %v3713_v2  ;;  %3263 = vmatprep.subr.bf16.mxu1 %v4566_v1 }
  0x3b   :  { %2744 = vmatmul.mubr.f32.vlgmr.msra.gmra.mrb[0].mxu0 %v216_v40  ;;  %v1137_v0 = vsub.f32 %v3831_v57, %v4563_v62  ;;  %v1151_v11 = vsub.f32 %v3837_v59, %v4561_v5  ;;  %vm3886_vm11 = vcmp.eq.s32.totalorder %v834_v21, %v3722_v6  ;;  %v56_v26 = vadd.s32 56, %v3713_v2 }
  0x3c   :  { %3229 = vmatpush3.bf16.msra.mxu0 %v3228_v37  ;;  %2754 = vmatprep.mubr.msk.f32.mxu0 %vm3662_vm0, %v4568_v4  ;;  %v1145_v10 = vand.u32 4294901760, %v1144_v3  ;;  %v1158_v13 = vsub.f32 %v3839_v60, %v4560_v7  ;;  %vm3891_vm12 = vcmp.eq.s32.totalorder %v841_v22, %v3722_v6  ;;  %v2393_v27 = vsel %vm3886_vm11, 1.0, %v4568_v4 }
  0x3d   :  { %3230 = vmatprep.subr.bf16.mxu0 %v4566_v1  ;;  %v1138_v8 = vand.u32 4294901760, %v1137_v0  ;;  %v1152_v15 = vand.u32 4294901760, %v1151_v11  ;;  %v2394_v28 = vsel %vm3891_vm12, 1.0, %v4568_v4  ;;  %v848_v31 = vand.u32 31, %v55_v25 }
  0x3e   :  { %v1159_v16 = vand.u32 4294901760, %v1158_v13  ;;  %v855_v32 = vand.u32 31, %v56_v26  ;;  %v57_v39 = vadd.s32 64, %v3713_v2  ;;  %v58_v40 = vadd.s32 72, %v3713_v2 }
  0x3f   :  { %v3871_v12 = vpack.c.bf16 %v1145_v10, %v1138_v8  ;;  %vm3910_vm13 = vcmp.eq.s32.totalorder %v848_v31, %v3722_v6  ;;  %v59_v0 = vadd.s32 80, %v3713_v2  ;;  %v61_v22 = vadd.s32 96, %v3713_v2 }
  0x40   :  { %3232 = vmatpush3.bf16.msra.mxu0 %v3231_v41  ;;  %v3876_v17 = vpack.c.bf16 %v1159_v16, %v1152_v15  ;;  %vm3915_vm14 = vcmp.eq.s32.totalorder %v855_v32, %v3722_v6  ;;  %v2395_v37 = vsel %vm3910_vm13, 1.0, %v4568_v4  ;;  %v862_v45 = vand.u32 31, %v57_v39 }
  0x41   :  { %3233 = vmatprep.subr.bf16.mxu0 %v4566_v1  ;;  %v2396_v38 = vsel %vm3915_vm14, 1.0, %v4568_v4  ;;  %v869_v46 = vand.u32 31, %v58_v40  ;;  %v876_v15 = vand.u32 31, %v59_v0  ;;  %v883_v16 = vand.u32 31, %v60_v49  ;;  %vm4082_vm10 = vmpackc.low %vm3915_vm14, %vm3910_vm13 }
  0x42   :  { %v3935_v44 = vsub.f32 %v2396_v38, %v2396_v38  ;;  %vm3948_vm1 = vcmp.eq.s32.totalorder %v862_v45, %v3722_v6  ;;  %v62_v51 = vadd.s32 104, %v3713_v2 }
  0x43   :  { %2755 = vmatmul.mubr.f32.vlgmr.msra.gmra.mrb[0].mxu0 %v3771_v29  ;;  %vm3953_vm2 = vcmp.eq.s32.totalorder %v869_v46, %v3722_v6  ;;  %v2397_v10 = vsel %vm3948_vm1, 1.0, %v4568_v4  ;;  %vm3999_vm5 = vcmp.eq.s32.totalorder %v883_v16, %v3722_v6  ;;  %v63_v46 = vadd.s32 112, %v3713_v2 }
  0x44   :  { %3235 = vmatpush3.bf16.msra.mxu0 %v3234_v42  ;;  %2765 = vmatprep.mubr.msk.f32.mxu0 %vm3662_vm0, %v4568_v4  ;;  %v4556_v55 = vand.u32 4294901760, %v3935_v44  ;;  %v2398_v11 = vsel %vm3953_vm2, 1.0, %v4568_v4  ;;  %v3977_v13 = vsub.f32 %v2397_v10, %v2397_v10  ;;  %v897_v45 = vand.u32 31, %v62_v51 }
  0x45   :  { %3236 = vmatprep.subr.bf16.mxu0 %v4566_v1  ;;  %v3980_v21 = vsub.f32 %v2398_v11, %v2398_v11  ;;  %v904_v10 = vand.u32 31, %v63_v46 }
  0x46   :  { %v1186_v8 = vsub.f32 %v3935_v44, %v4556_v55  ;;  %v4555_v26 = vand.u32 4294901760, %v3977_v13  ;;  %vm4050_vm8 = vcmp.eq.s32.totalorder %v897_v45, %v3722_v6 }
  0x47   :  { %v4554_v31 = vand.u32 4294901760, %v3980_v21  ;;  %v2402_v16 = vsel %vm4050_vm8, 1.0, %v4568_v4  ;;  %vm4074_vm9 = vcmp.eq.s32.totalorder %v904_v10, %v3722_v6 }
  0x48   :  { %3238 = vmatpush3.bf16.msra.mxu0 %v3237_v43  ;;  %v3933_v43 = vsub.f32 %v2395_v37, %v2395_v37  ;;  %v1187_v20 = vand.u32 4294901760, %v1186_v8  ;;  %v2400_v37 = vsel %vm3999_vm5, 1.0, %v4568_v4  ;;  %v1193_v38 = vsub.f32 %v3977_v13, %v4555_v26 }
  0x49   :  { %3239 = vmatprep.subr.bf16.mxu0 %v4566_v1  ;;  %v4022_v40 = vsub.f32 %v2400_v37, %v2400_v37  ;;  %v2403_v45 = vsel %vm4074_vm9, 1.0, %v4568_v4 }
  0x4a   :  { %v4557_v52 = vand.u32 4294901760, %v3933_v43  ;;  %v1194_v0 = vand.u32 4294901760, %v1193_v38  ;;  %v4100_v46 = vsub.f32 %v2403_v45, %v2403_v45 }
  0x4b   :  { %2766 = vmatmul.mubr.f32.vlgmr.msra.gmra.mrb[0].mxu0 %v213_v30  ;;  %v3905_v30 = vsub.f32 %v2394_v28, %v2394_v28 }
  0x4c   :  { %3241 = vmatpush3.bf16.msk.msra.mxu0 %vm3741_vm4, %v4564_v14  ;;  %2776 = vmatprep.mubr.msk.f32.mxu0 %vm3662_vm0, %v4568_v4  ;;  %v1179_v3 = vsub.f32 %v3933_v43, %v4557_v52  ;;  %v4549_v58 = vand.u32 4294901760, %v4100_v46 }
  0x4d   :  { %3242 = vmatprep.subr.bf16.mxu0 %v4566_v1  ;;  %v4558_v34 = vand.u32 4294901760, %v3905_v30 }
  0x4e   :  { %v1180_v19 = vand.u32 4294901760, %v1179_v3  ;;  %v4552_v3 = vand.u32 4294901760, %v4022_v40 }
  0x4f   :  { %v1172_v42 = vsub.f32 %v3905_v30, %v4558_v34 }
  0x50   :  { %3244 = vmatpush3.bf16.msk.msra.mxu0 %vm3755_vm6, %v4564_v14  ;;  %v4007_v53 = vpack.c.bf16 %v1187_v20, %v1180_v19 }
  0x51   :  { %3245 = vmatprep.subr.bf16.mxu0 %v4566_v1  ;;  %v1173_v50 = vand.u32 4294901760, %v1172_v42  ;;  %v1200_v42 = vsub.f32 %v3980_v21, %v4554_v31 }
  0x53   :  { %2777 = vmatmul.mubr.f32.vlgmr.msra.gmra.mrb[0].mxu0 %v214_v35 }
  0x54   :  { %3247 = vmatpush3.bf16.msra.mxu0 %v3246_v56  ;;  %2787 = vmatprep.mubr.msk.f32.mxu0 %vm3662_vm0, %v4568_v4 }
  0x55   :  { %3248 = vmatprep.subr.bf16.mxu0 %v4566_v1 }
  0x58   :  { %3250 = vmatpush3.bf16.msra.mxu0 %v3249_v61 }
  0x59   :  { %3251 = vmatprep.subr.bf16.mxu0 %v4566_v1 }
  0x5b   :  { %2788 = vmatmul.mubr.f32.vlgmr.msra.gmra.mrb[0].mxu0 %v3771_v29 }
  0x5c   :  { %3253 = vmatpush3.bf16.msk.msra.mxu0 %vm3741_vm4, %v4564_v14  ;;  %2798 = vmatprep.mubr.msk.f32.mxu0 %vm3662_vm0, %v4568_v4  ;;  %vm3994_vm4 = vcmp.eq.s32.totalorder %v876_v15, %v3722_v6  ;;  %v1214_v15 = vsub.f32 %v4022_v40, %v4552_v3 }
  0x5d   :  { %3254 = vmatprep.subr.bf16.mxu0 %v4566_v1  ;;  %v2399_v32 = vsel %vm3994_vm4, 1.0, %v4568_v4  ;;  %vm4140_vm13 = vmpackc.low %vm3999_vm5, %vm3994_vm4 }
  0x5e   :  { %v4020_v39 = vsub.f32 %v2399_v32, %v2399_v32  ;;  %v4193_v32 = vpack.c.bf16 %v3980_v21, %v3977_v13 }
  0x60   :  { %3256 = vmatpush3.bf16.msk.msra.mxu0 %vm3755_vm6, %v4564_v14  ;;  %vm4034_vm6 = vmpackc.low %vm3891_vm12, %vm3886_vm11  ;;  %v4553_v49 = vand.u32 4294901760, %v4020_v39  ;;  %v4197_v36 = vpack.c.bf16 %v4022_v40, %v4020_v39 }
  0x61   :  { %3425 = vmatprep.subr.bf16.mxu0 %v4566_v1  ;;  %3265 = vmatpush3.bf16.msk.msra.mxu1 %vm4034_vm6, %v4564_v14  ;;  %vm4110_vm12 = vmpackc.low %vm3953_vm2, %vm3948_vm1 }
  0x62   :  { %3266 = vmatprep.subr.bf16.mxu1 %v4566_v1  ;;  %v1207_v11 = vsub.f32 %v4020_v39, %v4553_v49 }
  0x63   :  { %2799 = vmatmul.mubr.f32.vlgmr.msra.gmra.mrb[0].mxu0 %v3771_v29  ;;  %v3903_v29 = vsub.f32 %v2393_v27, %v2393_v27 }
  0x64   :  { %3427 = vmatpush3.bf16.msra.mxu0 %v3871_v12  ;;  %3078 = vmatprep.mubr.msk.f32.mxu0 %vm3662_vm0, %v4568_v4  ;;  %v1208_v38 = vand.u32 4294901760, %v1207_v11 }
  0x65   :  { %3428 = vmatprep.subr.bf16.mxu0 %v4566_v1  ;;  %v4559_v33 = vand.u32 4294901760, %v3903_v29  ;;  %3268 = vmatpush3.bf16.msk.msra.mxu1 %vm4082_vm10, %v4564_v14  ;;  %v4185_v23 = vpack.c.bf16 %v3905_v30, %v3903_v29 }
  0x66   :  { %3269 = vmatprep.subr.bf16.mxu1 %v4566_v1 }
  0x67   :  { %v1165_v41 = vsub.f32 %v3903_v29, %v4559_v33 }
  0x68   :  { %3430 = vmatpush3.bf16.msra.mxu0 %v3876_v17 }
  0x69   :  { %3431 = vmatprep.subr.bf16.mxu0 %v4566_v1  ;;  %v1166_v48 = vand.u32 4294901760, %v1165_v41  ;;  %v890_v41 = vand.u32 31, %v61_v22  ;;  %v4071_v22 = vsub.f32 %v2402_v16, %v2402_v16  ;;  %3271 = vmatpush3.bf16.msk.msra.mxu1 %vm4110_vm12, %v4564_v14 }
  0x6a   :  { %3272 = vmatprep.subr.bf16.mxu1 %v4566_v1 }
  0x6b   :  { %v3962_v47 = vpack.c.bf16 %v1173_v50, %v1166_v48  ;;  %v64_v48 = vadd.s32 120, %v3713_v2  ;;  %vm4042_vm7 = vcmp.eq.s32.totalorder %v890_v41, %v3722_v6  ;;  %v1201_v2 = vand.u32 4294901760, %v1200_v42 }
  0x6c   :  { %v2401_v24 = vsel %vm4042_vm7, 1.0, %v4568_v4  ;;  %v1215_v41 = vand.u32 4294901760, %v1214_v15  ;;  %v4550_v35 = vand.u32 4294901760, %v4071_v22  ;;  %v1235_v15 = vsub.f32 %v4100_v46, %v4549_v58  ;;  %vm4159_vm14 = vmpackc.low %vm4050_vm8, %vm4042_vm7 }
  0x6d   :  { %3433 = vmatpush3.bf16.msra.mxu0 %v3962_v47  ;;  %v4067_v19 = vsub.f32 %v2401_v24, %v2401_v24  ;;  %v4069_v20 = vpack.c.bf16 %v1201_v2, %v1194_v0  ;;  %v911_v51 = vand.u32 31, %v64_v48  ;;  %3274 = vmatpush3.bf16.msk.msra.mxu1 %vm4140_vm13, %v4564_v14 }
  0x6e   :  { %3434 = vmatprep.subr.bf16.mxu0 %v4566_v1  ;;  %v4103_v48 = vpack.c.bf16 %v1215_v41, %v1208_v38  ;;  %v1228_v24 = vsub.f32 %v4071_v22, %v4550_v35  ;;  %v1236_v41 = vand.u32 4294901760, %v1235_v15  ;;  %3275 = vmatprep.subr.bf16.mxu1 %v4566_v1  ;;  %v4209_v15 = vld [vmem:[#allocation2 + $0x10] sm:$0xff] }
  0x6f   :  { %v4551_v42 = vand.u32 4294901760, %v4067_v19  ;;  %vm4096_vm11 = vcmp.eq.s32.totalorder %v911_v51, %v3722_v6  ;;  %4628 = vst [vmem:[#allocation13_spill] sm:$0xff] %v4209_v15 }
  0x70   :  { %v2404_v2 = vsel %vm4096_vm11, 1.0, %v4568_v4  ;;  %v1229_v11 = vand.u32 4294901760, %v1228_v24  ;;  %vm4175_vm1 = vmpackc.low %vm4096_vm11, %vm4074_vm9  ;;  %v4201_v24 = vpack.c.bf16 %v4071_v22, %v4067_v19 }
  0x71   :  { %3436 = vmatpush3.bf16.msra.mxu0 %v4007_v53  ;;  %v1221_v6 = vsub.f32 %v4067_v19, %v4551_v42  ;;  %v4124_v10 = vsub.f32 %v2404_v2, %v2404_v2  ;;  %3277 = vmatpush3.bf16.msk.msra.mxu1 %vm4159_vm14, %v4564_v14  ;;  %v4189_v2 = vpack.c.bf16 %v3935_v44, %v3933_v43 }
  0x72   :  { %3437 = vmatprep.subr.bf16.mxu0 %v4566_v1  ;;  %3278 = vmatprep.subr.bf16.mxu1 %v4566_v1 }
  0x73   :  { %v1222_v61 = vand.u32 4294901760, %v1221_v6  ;;  %v4548_v16 = vand.u32 4294901760, %v4124_v10 }
  0x75   :  { %3439 = vmatpush3.bf16.msra.mxu0 %v4069_v20  ;;  %v4144_v38 = vpack.c.bf16 %v1229_v11, %v1222_v61  ;;  %v1242_v45 = vsub.f32 %v4124_v10, %v4548_v16  ;;  %3280 = vmatpush3.bf16.msk.msra.mxu1 %vm4175_vm1, %v4564_v14  ;;  %v4205_v61 = vpack.c.bf16 %v4124_v10, %v4100_v46  ;;  %v4207_v11 = vld [vmem:[#allocation2 + $0x8] sm:$0xff]  ;;  %v4212_v16 = vld [vmem:[#allocation2 + $0x18] sm:$0xff] }
  0x76   :  { %3440 = vmatprep.subr.bf16.mxu0 %v4566_v1  ;;  %3281 = vmatprep.subr.bf16.mxu1 %v4566_v1  ;;  %4627 = vst [vmem:[#allocation12_spill] sm:$0xff] %v4207_v11  ;;  %4629 = vst [vmem:[#allocation14_spill] sm:$0xff] %v4212_v16 }
  0x77   :  { %v1243_v27 = vand.u32 4294901760, %v1242_v45 }
  0x79   :  { %3442 = vmatpush3.bf16.msra.mxu0 %v4103_v48  ;;  %v4163_v6 = vpack.c.bf16 %v1243_v27, %v1236_v41 }
  0x7a   :  { %3443 = vmatprep.subr.bf16.mxu0 %v4566_v1 }
  0x7d   :  { %3445 = vmatpush3.bf16.msra.mxu0 %v4144_v38 }
  0x7e   :  { %3446 = vmatprep.subr.bf16.mxu0 %v4566_v1 }
  0x81   :  { %3448 = vmatpush3.bf16.msra.mxu0 %v4163_v6 }
  0x82   :  { %3449 = vmatprep.subr.bf16.mxu0 %v4566_v1 }
 0x136   :  { %v768_v41 = vpop.f32.mrb[0].mxu0 }
 0x137   :  { %v775_v45 = vrot.slane %v768_v41, %v3737_v9  ;;  %v2800_v27 = vpop.f32.mrb[1].mxu0 }
 0x139   :  { %v776_v58 = vsub.f32 %v3752_v18, %v775_v45  ;;  %v777_v35 = vsub.f32 %v4207_v11, %v775_v45  ;;  %v778_v42 = vsub.f32 %v4209_v15, %v775_v45  ;;  %v779_v3 = vsub.f32 %v4212_v16, %v775_v45 }
 0x13b   :  { %v780_v49 = vadd.f32 %v777_v35, %v776_v58  ;;  %v789_v31 = vmul.f32 %v776_v58, %v776_v58  ;;  %v790_v26 = vmul.f32 %v777_v35, %v777_v35  ;;  %v791_v52 = vmul.f32 %v778_v42, %v778_v42 }
 0x13c   :  { %v792_v7 = vmul.f32 %v779_v3, %v779_v3 }
 0x13d   :  { %v781_v55 = vadd.f32 %v780_v49, %v778_v42  ;;  %v793_v34 = vadd.f32 %v790_v26, %v789_v31  ;;  %v4636_v31 = vand.u32 4294901760, %v3839_v60 }
 0x13f   :  { %v782_v33 = vadd.f32 %v781_v55, %v779_v3  ;;  %v794_v41 = vadd.f32 %v793_v34, %v791_v52  ;;  %v3306_v55 = vpack.c.bf16 %v3823_v54, %v3831_v57  ;;  %v4634_v52 = vand.u32 4294901760, %v3823_v54 }
 0x140   :  { %v4637_v54 = vand.u32 4294901760, %v3903_v29 }
 0x141   :  { %v783_v27 = vrot.slane %v782_v33, 4  ;;  %v795_v5 = vadd.f32 %v794_v41, %v792_v7  ;;  %v46_v41 = vld [vmem:[#allocation5 + $0x10] sm:$0xff] }
 0x143   :  { %v784_v63 = vadd.f32 %v783_v27, %v782_v33  ;;  %v796_v62 = vrot.slane %v795_v5, 4  ;;  %v47_v27 = vld [vmem:[#allocation5 + $0x18] sm:$0xff] }
 0x145   :  { %v785_v14 = vrot.slane %v784_v63, 2  ;;  %v797_v1 = vadd.f32 %v796_v62, %v795_v5 }
 0x147   :  { %v798_v4 = vrot.slane %v797_v1, 2  ;;  %v786_v11 = vadd.f32 %v785_v14, %v784_v63  ;;  %v4630_v14 = vmov 0.0  }
 0x149   :  { %v799_v15 = vadd.f32 %v798_v4, %v797_v1  ;;  %v787_v18 = vrot.slane %v786_v11, 1  ;;  %v3309_v4 = vpack.c.bf16 %v3839_v60, %v3837_v59  ;;  %v4640_v60 = vand.u32 4294901760, %v3935_v44 }
 0x14a   :  { %v4644_v44 = vand.u32 4294901760, %v4022_v40  ;;  %v4648_v40 = vand.u32 4294901760, %v4124_v10 }
 0x14b   :  { %v800_v45 = vrot.slane %v799_v15, 1  ;;  %v788_v16 = vadd.f32 %v787_v18, %v786_v11  ;;  %v4631_v18 = vmov 0.0|0.0  }
 0x14d   :  { %v801_v58 = vadd.f32 %v800_v45, %v799_v15  ;;  %v4218_v35 = vand.u32 4294901760, %v788_v16  ;;  %v45_v15 = vld [vmem:[#allocation5 + $0x8] sm:$0xff] }
 0x14f   :  { %v4222_v26 = vand.u32 4294901760, %v801_v58  ;;  %v4225_v7 = vsub.f32 %v788_v16, %v4218_v35 }
 0x151   :  { %3079 = vmatmul.mubr.f32.vlgmr.msra.gmra.mrb[2].mxu0 %v4222_v26  ;;  %v1125_v62 = vand.u32 4294901760, %v4225_v7  ;;  %v4230_v1 = vsub.f32 %v801_v58, %v4222_v26 }
 0x152   :  { %3451 = vmatpush3.bf16.msra.mxu0 %v3306_v55  ;;  %3113 = vmatprep.mubr.msk.f32.mxu0 %vm3662_vm0, %v4630_v14 }
 0x153   :  { %3452 = vmatprep.subr.bf16.mxu0 %v4631_v18  ;;  %v1126_v63 = vsub.f32 %v4225_v7, %v1125_v62  ;;  %v1766_v5 = vand.u32 4294901760, %v4230_v1 }
 0x155   :  { %v1127_v33 = vand.u32 4294901760, %v1126_v63  ;;  %v4244_v34 = vsub.f32 %v4230_v1, %v1766_v5  ;;  %v4652_v63 = vld [vmem:[#allocation14_spill] sm:$0xff] }
 0x156   :  { %3454 = vmatpush3.bf16.msra.mxu0 %v3309_v4 }
 0x157   :  { %2834 = vmatmul.mubr.f32.vlgmr.msra.gmra.mrb[0].mxu1 %v1127_v33  ;;  %3455 = vmatprep.subr.bf16.mxu0 %v4631_v18  ;;  %v1768_v56 = vand.u32 4294901760, %v4244_v34 }
 0x158   :  { %3283 = vmatpush3.bf16.msra.mxu1 %v3871_v12  ;;  %2868 = vmatprep.mubr.msk.f32.mxu1 %vm3662_vm0, %v4630_v14  ;;  %v4632_v12 = vmov 1.0|1.0  }
 0x159   :  { %3284 = vmatprep.subr.bf16.mxu1 %v4631_v18 }
 0x15a   :  { %3457 = vmatpush3.bf16.msra.mxu0 %v4185_v23 }
 0x15b   :  { %3458 = vmatprep.subr.bf16.mxu0 %v4631_v18 }
 0x15c   :  { %3286 = vmatpush3.bf16.msra.mxu1 %v3876_v17  ;;  %v4633_v17 = vand.u32 4294901760, %v3831_v57  ;;  %v4638_v57 = vand.u32 4294901760, %v3905_v30  ;;  %v4641_v30 = vand.u32 4294901760, %v3977_v13  ;;  %v4645_v13 = vand.u32 4294901760, %v4067_v19 }
 0x15d   :  { %3287 = vmatprep.subr.bf16.mxu1 %v4631_v18 }
 0x15e   :  { %3460 = vmatpush3.bf16.msra.mxu0 %v4189_v2  ;;  %v3360_v3 = vpack.c.bf16 %v4638_v57, %v4637_v54 }
 0x15f   :  { %3461 = vmatprep.subr.bf16.mxu0 %v4631_v18 }
 0x160   :  { %3289 = vmatpush3.bf16.msra.mxu1 %v3962_v47  ;;  %v3354_v47 = vpack.c.bf16 %v4634_v52, %v4633_v17 }
 0x161   :  { %3290 = vmatprep.subr.bf16.mxu1 %v4631_v18 }
 0x162   :  { %3463 = vmatpush3.bf16.msra.mxu0 %v4193_v32 }
 0x163   :  { %3464 = vmatprep.subr.bf16.mxu0 %v4631_v18 }
 0x164   :  { %3292 = vmatpush3.bf16.msra.mxu1 %v4007_v53  ;;  %v4635_v53 = vand.u32 4294901760, %v3837_v59  ;;  %v4639_v59 = vand.u32 4294901760, %v3933_v43  ;;  %v4643_v43 = vand.u32 4294901760, %v4020_v39  ;;  %v4647_v39 = vand.u32 4294901760, %v4100_v46 }
 0x165   :  { %3293 = vmatprep.subr.bf16.mxu1 %v4631_v18 }
 0x166   :  { %3466 = vmatpush3.bf16.msra.mxu0 %v4197_v36  ;;  %v3357_v49 = vpack.c.bf16 %v4636_v31, %v4635_v53  ;;  %v3363_v29 = vpack.c.bf16 %v4640_v60, %v4639_v59 }
 0x167   :  { %3467 = vmatprep.subr.bf16.mxu0 %v4631_v18 }
 0x168   :  { %3295 = vmatpush3.bf16.msra.mxu1 %v4069_v20  ;;  %v4642_v20 = vand.u32 4294901760, %v3980_v21  ;;  %v4646_v21 = vand.u32 4294901760, %v4071_v22 }
 0x169   :  { %3296 = vmatprep.subr.bf16.mxu1 %v4631_v18 }
 0x16a   :  { %3469 = vmatpush3.bf16.msra.mxu0 %v4201_v24  ;;  %v3366_v42 = vpack.c.bf16 %v4642_v20, %v4641_v30  ;;  %v3372_v16 = vpack.c.bf16 %v4646_v21, %v4645_v13 }
 0x16b   :  { %3470 = vmatprep.subr.bf16.mxu0 %v4631_v18 }
 0x16c   :  { %3298 = vmatpush3.bf16.msra.mxu1 %v4103_v48  ;;  %v3369_v48 = vpack.c.bf16 %v4644_v44, %v4643_v43 }
 0x16d   :  { %3299 = vmatprep.subr.bf16.mxu1 %v4631_v18 }
 0x16e   :  { %3472 = vmatpush3.bf16.msra.mxu0 %v4205_v61 }
 0x16f   :  { %3473 = vmatprep.subr.bf16.mxu0 %v4631_v18 }
 0x170   :  { %3301 = vmatpush3.bf16.msra.mxu1 %v4144_v38  ;;  %v3375_v38 = vpack.c.bf16 %v4648_v40, %v4647_v39 }
 0x171   :  { %3114 = vmatmul.mubr.f32.vlgmr.msra.gmra.mrb[2].mxu0 %v4230_v1  ;;  %3302 = vmatprep.subr.bf16.mxu1 %v4631_v18  ;;  %v4650_v1 = vld [vmem:[#allocation12_spill] sm:$0xff] }
 0x172   :  { %3475 = vmatpush3.bf16.msk.msra.mxu0 %vm3943_vm15, %v4632_v12  ;;  %3148 = vmatprep.mubr.msk.f32.mxu0 %vm3662_vm0, %v4630_v14 }
 0x173   :  { %3476 = vmatprep.subr.bf16.mxu0 %v4631_v18 }
 0x174   :  { %3304 = vmatpush3.bf16.msra.mxu1 %v4163_v6 }
 0x175   :  { %3305 = vmatprep.subr.bf16.mxu1 %v4631_v18 }
 0x176   :  { %3478 = vmatpush3.bf16.msk.msra.mxu0 %vm3987_vm3, %v4632_v12 }
 0x177   :  { %2869 = vmatmul.mubr.f32.vlgmr.msra.gmra.mrb[0].mxu1 %v4218_v35  ;;  %3479 = vmatprep.subr.bf16.mxu0 %v4631_v18 }
 0x178   :  { %3307 = vmatpush3.bf16.msra.mxu1 %v3306_v55  ;;  %2903 = vmatprep.mubr.msk.f32.mxu1 %vm3662_vm0, %v4630_v14 }
 0x179   :  { %3308 = vmatprep.subr.bf16.mxu1 %v4631_v18 }
 0x17a   :  { %3481 = vmatpush3.bf16.msk.msra.mxu0 %vm4034_vm6, %v4632_v12 }
 0x17b   :  { %3482 = vmatprep.subr.bf16.mxu0 %v4631_v18 }
 0x17c   :  { %3310 = vmatpush3.bf16.msra.mxu1 %v3309_v4 }
 0x17d   :  { %3311 = vmatprep.subr.bf16.mxu1 %v4631_v18 }
 0x17e   :  { %3484 = vmatpush3.bf16.msk.msra.mxu0 %vm4082_vm10, %v4632_v12 }
 0x17f   :  { %3485 = vmatprep.subr.bf16.mxu0 %v4631_v18 }
 0x180   :  { %3313 = vmatpush3.bf16.msra.mxu1 %v4185_v23 }
 0x181   :  { %3314 = vmatprep.subr.bf16.mxu1 %v4631_v18 }
 0x182   :  { %3487 = vmatpush3.bf16.msk.msra.mxu0 %vm4110_vm12, %v4632_v12 }
 0x183   :  { %3488 = vmatprep.subr.bf16.mxu0 %v4631_v18 }
 0x184   :  { %3316 = vmatpush3.bf16.msra.mxu1 %v4189_v2 }
 0x185   :  { %3317 = vmatprep.subr.bf16.mxu1 %v4631_v18 }
 0x186   :  { %3490 = vmatpush3.bf16.msk.msra.mxu0 %vm4140_vm13, %v4632_v12 }
 0x187   :  { %3491 = vmatprep.subr.bf16.mxu0 %v4631_v18 }
 0x188   :  { %3319 = vmatpush3.bf16.msra.mxu1 %v4193_v32 }
 0x189   :  { %3320 = vmatprep.subr.bf16.mxu1 %v4631_v18 }
 0x18a   :  { %3493 = vmatpush3.bf16.msk.msra.mxu0 %vm4159_vm14, %v4632_v12 }
 0x18b   :  { %3494 = vmatprep.subr.bf16.mxu0 %v4631_v18 }
 0x18c   :  { %3322 = vmatpush3.bf16.msra.mxu1 %v4197_v36 }
 0x18d   :  { %3323 = vmatprep.subr.bf16.mxu1 %v4631_v18 }
 0x18e   :  { %3496 = vmatpush3.bf16.msk.msra.mxu0 %vm4175_vm1, %v4632_v12 }
 0x18f   :  { %3497 = vmatprep.subr.bf16.mxu0 %v4631_v18 }
 0x190   :  { %3325 = vmatpush3.bf16.msra.mxu1 %v4201_v24 }
 0x191   :  { %3149 = vmatmul.mubr.f32.vlgmr.msra.gmra.mrb[2].mxu0 %v1766_v5  ;;  %3326 = vmatprep.subr.bf16.mxu1 %v4631_v18 }
 0x192   :  { %3499 = vmatpush3.bf16.msra.mxu0 %v3354_v47  ;;  %3183 = vmatprep.mubr.msk.f32.mxu0 %vm3662_vm0, %v4630_v14 }
 0x193   :  { %3500 = vmatprep.subr.bf16.mxu0 %v4631_v18 }
 0x194   :  { %3328 = vmatpush3.bf16.msra.mxu1 %v4205_v61  ;;  %v44_v61 = vld [vmem:[#allocation5] sm:$0xff] }
 0x195   :  { %3329 = vmatprep.subr.bf16.mxu1 %v4631_v18 }
 0x196   :  { %3502 = vmatpush3.bf16.msra.mxu0 %v3357_v49 }
 0x197   :  { %2904 = vmatmul.mubr.f32.vlgmr.msra.gmra.mrb[0].mxu1 %v4225_v7  ;;  %3503 = vmatprep.subr.bf16.mxu0 %v4631_v18  ;;  %v4649_v7 = vld [vmem:[#allocation11_spill] sm:$0xff] }
 0x198   :  { %3331 = vmatpush3.bf16.msk.msra.mxu1 %vm3943_vm15, %v4632_v12  ;;  %2938 = vmatprep.mubr.msk.f32.mxu1 %vm3662_vm0, %v4630_v14 }
 0x199   :  { %3332 = vmatprep.subr.bf16.mxu1 %v4631_v18 }
 0x19a   :  { %3505 = vmatpush3.bf16.msra.mxu0 %v3360_v3 }
 0x19b   :  { %3506 = vmatprep.subr.bf16.mxu0 %v4631_v18 }
 0x19c   :  { %3334 = vmatpush3.bf16.msk.msra.mxu1 %vm3987_vm3, %v4632_v12 }
 0x19d   :  { %3335 = vmatprep.subr.bf16.mxu1 %v4631_v18 }
 0x19e   :  { %3508 = vmatpush3.bf16.msra.mxu0 %v3363_v29 }
 0x19f   :  { %3509 = vmatprep.subr.bf16.mxu0 %v4631_v18 }
 0x1a0   :  { %3337 = vmatpush3.bf16.msk.msra.mxu1 %vm4034_vm6, %v4632_v12 }
 0x1a1   :  { %3338 = vmatprep.subr.bf16.mxu1 %v4631_v18 }
 0x1a2   :  { %3511 = vmatpush3.bf16.msra.mxu0 %v3366_v42 }
 0x1a3   :  { %3512 = vmatprep.subr.bf16.mxu0 %v4631_v18 }
 0x1a4   :  { %3340 = vmatpush3.bf16.msk.msra.mxu1 %vm4082_vm10, %v4632_v12 }
 0x1a5   :  { %3341 = vmatprep.subr.bf16.mxu1 %v4631_v18 }
 0x1a6   :  { %3514 = vmatpush3.bf16.msra.mxu0 %v3369_v48 }
 0x1a7   :  { %3515 = vmatprep.subr.bf16.mxu0 %v4631_v18 }
 0x1a8   :  { %3343 = vmatpush3.bf16.msk.msra.mxu1 %vm4110_vm12, %v4632_v12 }
 0x1a9   :  { %3344 = vmatprep.subr.bf16.mxu1 %v4631_v18 }
 0x1aa   :  { %3517 = vmatpush3.bf16.msra.mxu0 %v3372_v16 }
 0x1ab   :  { %3518 = vmatprep.subr.bf16.mxu0 %v4631_v18 }
 0x1ac   :  { %3346 = vmatpush3.bf16.msk.msra.mxu1 %vm4140_vm13, %v4632_v12 }
 0x1ad   :  { %3347 = vmatprep.subr.bf16.mxu1 %v4631_v18 }
 0x1ae   :  { %3520 = vmatpush3.bf16.msra.mxu0 %v3375_v38 }
 0x1af   :  { %3521 = vmatprep.subr.bf16.mxu0 %v4631_v18 }
 0x1b0   :  { %3349 = vmatpush3.bf16.msk.msra.mxu1 %vm4159_vm14, %v4632_v12 }
 0x1b1   :  { %3184 = vmatmul.mubr.f32.vlgmr.msra.gmra.mrb[2].mxu0 %v4222_v26  ;;  %3350 = vmatprep.subr.bf16.mxu1 %v4631_v18 }
 0x1b2   :  { %3523 = vmatpush3.bf16.msk.msra.mxu0 %vm3943_vm15, %v4632_v12  ;;  %3218 = vmatprep.mubr.msk.f32.mxu0 %vm3662_vm0, %v4630_v14 }
 0x1b3   :  { %3524 = vmatprep.subr.bf16.mxu0 %v4631_v18 }
 0x1b4   :  { %3352 = vmatpush3.bf16.msk.msra.mxu1 %vm4175_vm1, %v4632_v12 }
 0x1b5   :  { %3353 = vmatprep.subr.bf16.mxu1 %v4631_v18 }
 0x1b6   :  { %3526 = vmatpush3.bf16.msk.msra.mxu0 %vm3987_vm3, %v4632_v12 }
 0x1b7   :  { %2939 = vmatmul.mubr.f32.vlgmr.msra.gmra.mrb[0].mxu1 %v1125_v62  ;;  %3527 = vmatprep.subr.bf16.mxu0 %v4631_v18 }
 0x1b8   :  { %3355 = vmatpush3.bf16.msra.mxu1 %v3354_v47  ;;  %2973 = vmatprep.mubr.msk.f32.mxu1 %vm3662_vm0, %v4630_v14 }
 0x1b9   :  { %3356 = vmatprep.subr.bf16.mxu1 %v4631_v18 }
 0x1ba   :  { %3529 = vmatpush3.bf16.msk.msra.mxu0 %vm4034_vm6, %v4632_v12 }
 0x1bb   :  { %3530 = vmatprep.subr.bf16.mxu0 %v4631_v18 }
 0x1bc   :  { %3358 = vmatpush3.bf16.msra.mxu1 %v3357_v49 }
 0x1bd   :  { %3359 = vmatprep.subr.bf16.mxu1 %v4631_v18 }
 0x1be   :  { %3532 = vmatpush3.bf16.msk.msra.mxu0 %vm4082_vm10, %v4632_v12 }
 0x1bf   :  { %3533 = vmatprep.subr.bf16.mxu0 %v4631_v18 }
 0x1c0   :  { %3361 = vmatpush3.bf16.msra.mxu1 %v3360_v3 }
 0x1c1   :  { %3362 = vmatprep.subr.bf16.mxu1 %v4631_v18 }
 0x1c2   :  { %3535 = vmatpush3.bf16.msk.msra.mxu0 %vm4110_vm12, %v4632_v12 }
 0x1c3   :  { %3536 = vmatprep.subr.bf16.mxu0 %v4631_v18 }
 0x1c4   :  { %3364 = vmatpush3.bf16.msra.mxu1 %v3363_v29 }
 0x1c5   :  { %3365 = vmatprep.subr.bf16.mxu1 %v4631_v18 }
 0x1c6   :  { %3538 = vmatpush3.bf16.msk.msra.mxu0 %vm4140_vm13, %v4632_v12 }
 0x1c7   :  { %3539 = vmatprep.subr.bf16.mxu0 %v4631_v18 }
 0x1c8   :  { %3367 = vmatpush3.bf16.msra.mxu1 %v3366_v42 }
 0x1c9   :  { %3368 = vmatprep.subr.bf16.mxu1 %v4631_v18 }
 0x1ca   :  { %3541 = vmatpush3.bf16.msk.msra.mxu0 %vm4159_vm14, %v4632_v12 }
 0x1cb   :  { %3542 = vmatprep.subr.bf16.mxu0 %v4631_v18 }
 0x1cc   :  { %3370 = vmatpush3.bf16.msra.mxu1 %v3369_v48 }
 0x1cd   :  { %3371 = vmatprep.subr.bf16.mxu1 %v4631_v18 }
 0x1ce   :  { %3544 = vmatpush3.bf16.msk.msra.mxu0 %vm4175_vm1, %v4632_v12 }
 0x1d0   :  { %3373 = vmatpush3.bf16.msra.mxu1 %v3372_v16 }
 0x1d1   :  { %3219 = vmatmul.mubr.f32.vlgmr.msra.gmra.mrb[2].mxu0 %v4222_v26  ;;  %3374 = vmatprep.subr.bf16.mxu1 %v4631_v18 }
 0x1d4   :  { %3376 = vmatpush3.bf16.msra.mxu1 %v3375_v38 }
 0x1d5   :  { %3377 = vmatprep.subr.bf16.mxu1 %v4631_v18 }
 0x1d7   :  { %2974 = vmatmul.mubr.f32.vlgmr.msra.gmra.mrb[0].mxu1 %v4218_v35 }
 0x1d8   :  { %3379 = vmatpush3.bf16.msk.msra.mxu1 %vm3943_vm15, %v4632_v12  ;;  %3008 = vmatprep.mubr.msk.f32.mxu1 %vm3662_vm0, %v4630_v14 }
 0x1d9   :  { %3380 = vmatprep.subr.bf16.mxu1 %v4631_v18 }
 0x1dc   :  { %3382 = vmatpush3.bf16.msk.msra.mxu1 %vm3987_vm3, %v4632_v12 }
 0x1dd   :  { %3383 = vmatprep.subr.bf16.mxu1 %v4631_v18 }
 0x1e0   :  { %3385 = vmatpush3.bf16.msk.msra.mxu1 %vm4034_vm6, %v4632_v12 }
 0x1e1   :  { %3386 = vmatprep.subr.bf16.mxu1 %v4631_v18 }
 0x1e4   :  { %3388 = vmatpush3.bf16.msk.msra.mxu1 %vm4082_vm10, %v4632_v12 }
 0x1e5   :  { %3389 = vmatprep.subr.bf16.mxu1 %v4631_v18 }
 0x1e8   :  { %3391 = vmatpush3.bf16.msk.msra.mxu1 %vm4110_vm12, %v4632_v12 }
 0x1e9   :  { %3392 = vmatprep.subr.bf16.mxu1 %v4631_v18 }
 0x1ec   :  { %3394 = vmatpush3.bf16.msk.msra.mxu1 %vm4140_vm13, %v4632_v12 }
 0x1ed   :  { %3395 = vmatprep.subr.bf16.mxu1 %v4631_v18 }
 0x1f0   :  { %3397 = vmatpush3.bf16.msk.msra.mxu1 %vm4159_vm14, %v4632_v12 }
 0x1f1   :  { %3398 = vmatprep.subr.bf16.mxu1 %v4631_v18 }
 0x1f4   :  { %3400 = vmatpush3.bf16.msk.msra.mxu1 %vm4175_vm1, %v4632_v12 }
 0x1f5   :  { %3401 = vmatprep.subr.bf16.mxu1 %v4631_v18 }
 0x1f7   :  { %3009 = vmatmul.mubr.f32.vlgmr.msra.gmra.mrb[0].mxu1 %v4218_v35 }
 0x1f8   :  { %3403 = vmatpush3.bf16.msk.msra.mxu1 %vm3943_vm15, %v4632_v12  ;;  %3043 = vmatprep.mubr.msk.f32.mxu1 %vm3662_vm0, %v4630_v14  ;;  %v4651_v14 = vld [vmem:[#allocation13_spill] sm:$0xff] }
 0x1f9   :  { %3404 = vmatprep.subr.bf16.mxu1 %v4631_v18 }
 0x1fc   :  { %3406 = vmatpush3.bf16.msk.msra.mxu1 %vm3987_vm3, %v4632_v12 }
 0x1fd   :  { %3407 = vmatprep.subr.bf16.mxu1 %v4631_v18 }
 0x200   :  { %3409 = vmatpush3.bf16.msk.msra.mxu1 %vm4034_vm6, %v4632_v12 }
 0x201   :  { %3410 = vmatprep.subr.bf16.mxu1 %v4631_v18 }
 0x204   :  { %3412 = vmatpush3.bf16.msk.msra.mxu1 %vm4082_vm10, %v4632_v12 }
 0x205   :  { %3413 = vmatprep.subr.bf16.mxu1 %v4631_v18 }
 0x208   :  { %3415 = vmatpush3.bf16.msk.msra.mxu1 %vm4110_vm12, %v4632_v12 }
 0x209   :  { %3416 = vmatprep.subr.bf16.mxu1 %v4631_v18 }
 0x20c   :  { %3418 = vmatpush3.bf16.msk.msra.mxu1 %vm4140_vm13, %v4632_v12 }
 0x20d   :  { %3419 = vmatprep.subr.bf16.mxu1 %v4631_v18 }
 0x210   :  { %3421 = vmatpush3.bf16.msk.msra.mxu1 %vm4159_vm14, %v4632_v12 }
 0x211   :  { %3422 = vmatprep.subr.bf16.mxu1 %v4631_v18 }
 0x214   :  { %3424 = vmatpush3.bf16.msk.msra.mxu1 %vm4175_vm1, %v4632_v12 }
 0x217   :  { %3044 = vmatmul.mubr.f32.vlgmr.msra.gmra.mrb[2].mxu1 %v1768_v56 }
 0x2a4   :  { %v2320_v25 = vpop.f32.mrb[2].mxu0 }
 0x2a5   :  { %v3220_v50 = vpop.f32.mrb[3].mxu0 }
 0x2ca   :  { %v1679_v19 = vpop.f32.mrb[0].mxu1 }
 0x2cb   :  { %v3010_v22 = vpop.f32.mrb[1].mxu1  ;;  %v2324_v37 = vmul.f32 %v1679_v19, %v1679_v19 }
 0x2cd   :  { %v2326_v0 = vmul.f32 0.0078125, %v2324_v37 }
 0x2ea   :  { %v1770_v46 = vpop.f32.mrb[2].mxu1 }
 0x2eb   :  { %v3545_v10 = vadd.f32 %v2320_v25, %v1770_v46  ;;  %v3045_v51 = vpop.f32.mrb[3].mxu1 }
 0x2ed   :  { %v2327_v28 = vsub.f32 %v3545_v10, %v2326_v0 }
 0x2ef   :  { %v2329_v6 = vmul.f32 0.007874016, %v2327_v28 }
 0x2f1   :  { %v2330_v23 = vmax.f32 %v2329_v6, 0.0 }
 0x2f3   :  { %3583 = vrsqrt.f32 %v2330_v23  ;;  %vm2333_vm0 = vcmp.eq.f32.partialorder %v2330_v23, inf  ;;  %v2336_v8 = vand.u32 2147483648, %v2330_v23  ;;  %vm2335_vm15 = vcmp.eq.f32.partialorder %v2330_v23, 0.0 }
 0x2fd   :  { %v3584_v2 = vpop.eup %3583 }
 0x2fe   :  { %v2332_v32 = vmul.f32 %v3584_v2, %v2330_v23 }
 0x300   :  { %v2334_v36 = vsel %vm2333_vm0, %v2330_v23, %v2332_v32 }
 0x301   :  { %v2337_v24 = vsel %vm2335_vm15, %v2336_v8, %v2334_v36 }
 0x302   :  { %v2338_v11 = vmul.f32 0.05, %v2337_v24 }
 0x304   :  { %v2342_v45 = vrot.slane %v2338_v11, %v3737_v9 }
 0x306   :  { %v2343_v58 = vmul.f32 %v2342_v45, %v44_v61  ;;  %v2344_v35 = vmul.f32 %v2342_v45, %v45_v15  ;;  %v2345_v55 = vmul.f32 %v2342_v45, %v46_v41  ;;  %v2346_v26 = vmul.f32 %v2342_v45, %v47_v27 }
 0x308   :  { %v2347_v62 = vadd.f32 %v2343_v58, %v4649_v7  ;;  %v2348_v4 = vadd.f32 %v2344_v35, %v4650_v1  ;;  %v2349_v18 = vadd.f32 %v2345_v55, %v4651_v14  ;;  %v2350_v5 = vadd.f32 %v2346_v26, %v4652_v63 }
 0x30a   :  { %2351 = vst [vmem:[#allocation7] sm:$0xff] %v2347_v62  ;;  %2352 = vst [vmem:[#allocation7 + $0x8] sm:$0xff] %v2348_v4 }
 0x30b   :  { %2353 = vst [vmem:[#allocation7 + $0x10] sm:$0xff] %v2349_v18  ;;  %2354 = vst [vmem:[#allocation7 + $0x18] sm:$0xff] %v2350_v5 }
 0x30c   :  { %3640 = shalt.err (!%p3637_p6)
}
 0x30d   :  { %s3641_s10 = scalar_lea.hbm %s4547_s2, 512 }
 0x30e   :  { %p3642_p7 = scmp.ne.s32.totalorder %s4547_s2, %s3641_s10  ;;  %p3645_p8 = scmp.lt.u32.totalorder %s3641_s10, %s4547_s2 }
 0x310   :  { %p3647_p9 = pnand %p3645_p8, %p3642_p7 }
 0x312   :  { %3650 = shalt.err (!%p3647_p9)
}
 0x313   :  { %2366 = dma.vmem_to_hbm [thread:$0]  %s2361_s6, 512, %s4547_s2, [#allocation4], %s3658_s19, %s3658_s19, %s3659_s20  }
 0x314   :  { %3655 = dma.done.wait [#allocation4], 512  }
 0x315   :  { %3656 = vsyncadd [#allocation4], 4294966784 }
 0x316   :  { %2370 = vsyncpa [#allocation3], 1 }
 0x317   :  { %2371 = vsyncpa [#allocation6], 1 }
 0x318   :  { %2372 = vsyncpa [#allocation4], 1 }

</bundles_post_ra>
